<compile_context>
chip_gen: v7x
topology: tpu7x:2x2x1
jax: 0.10.0
libtpu: 0.0.40
codegen_flags: <defaults>
</compile_context>

<pallas_src>
import jax
import jax.numpy as jnp
from jax import lax
from jax.experimental import pallas as pl
from jax.experimental.pallas import tpu as pltpu

_MiB = 1024 * 1024


# ----------------------------------------------------------------------------
# Kernels
# ----------------------------------------------------------------------------
def _se_kernel(x_ref, w1_ref, b1_ref, w2_ref, b2_ref, o_ref):
    # x_ref/o_ref: (Bt, C, HW) -- C on sublanes, HW on lanes.
    # w1_ref: (S, C), b1_ref: (1, S), w2_ref: (C, S), b2_ref: (1, C)
    hw = x_ref.shape[-1]
    inv_hw = jnp.float32(1.0 / hw)

    # Squeeze: global average pool over HW (lane reduction), fp32 accumulate.
    pooled = jnp.sum(x_ref[...].astype(jnp.float32), axis=-1) * inv_hw  # (Bt, C)

    # Excitation, vectorized over the batch tile (contraction dims take the
    # place of explicit weight transposes -> native PyTorch weight layouts).
    h = lax.dot_general(pooled, w1_ref[...].astype(jnp.float32),
                        (((1,), (1,)), ((), ())),
                        preferred_element_type=jnp.float32) + b1_ref[...]   # (Bt, S)
    h = jnp.maximum(h, 0.0)
    s = lax.dot_general(h, w2_ref[...].astype(jnp.float32),
                        (((1,), (1,)), ((), ())),
                        preferred_element_type=jnp.float32) + b2_ref[...]   # (Bt, C)
    s = jax.nn.sigmoid(s)

    # Scale: re-read x from VMEM (do not hold the (Bt,C,HW) slab live across
    # the FC chain) and lane-broadcast the per-(batch, channel) scale over HW.
    o_ref[...] = (x_ref[...] * s[:, :, None].astype(x_ref.dtype)).astype(o_ref.dtype)


def _se_pool_kernel(x_ref, p_ref):
    # Fallback pass 1: per-channel global average pool.
    # x_ref: (1, Ct, HW); p_ref: (1, Ct, 1) fp32.
    hw = x_ref.shape[-1]
    p_ref[...] = (jnp.sum(x_ref[...].astype(jnp.float32), axis=-1, keepdims=True)
                  * jnp.float32(1.0 / hw))


def _se_scale_kernel(x_ref, s_ref, o_ref):
    # Fallback pass 2: apply the per-(batch, channel) scale.
    # x_ref/o_ref: (1, Ct, HW); s_ref: (1, Ct, 1) fp32.
    o_ref[...] = (x_ref[...] * s_ref[...].astype(x_ref.dtype)).astype(o_ref.dtype)


# ----------------------------------------------------------------------------
# Sizing helpers (padded-shape aware)
# ----------------------------------------------------------------------------
def _pad_up(n, m):
    return ((n + m - 1) // m) * m


def _sublane_mult(itemsize):
    # fp32 -> 8, bf16 -> 16, int8/fp8 -> 32 (sub-32-bit dtypes pack on sublanes)
    return max(8, 32 // int(itemsize))


def _padded_2d_bytes(shape, itemsize):
    r, c = shape
    return _pad_up(r, _sublane_mult(itemsize)) * _pad_up(c, 128) * int(itemsize)


def _vmem_capacity_bytes():
    try:
        info = pltpu.get_tpu_info()
        for attr in ("vmem_capacity_bytes", "vmem_size_bytes", "vmem_bytes"):
            v = getattr(info, attr, None)
            if v:
                return int(v)
    except Exception:
        pass
    return 64 * _MiB  # conservative default (v7x per-TC VMEM)


def _choose_batch_tile(batch, per_batch_bytes, budget_bytes):
    """Largest divisor of `batch` whose padded block fits the VMEM budget.

    Prefer >= 2 grid steps (so the batch axis can shard across v7x's 2 TCs and
    DMA overlaps compute across steps), but only when that does not shrink
    blocks below the DMA-efficient size (~2 MiB)."""
    cap = min(batch, max(1, budget_bytes // max(per_batch_bytes, 1)))
    if batch >= 2:
        halved = min(cap, max(1, batch // 2))
        if halved == cap or halved * per_batch_bytes >= 2 * _MiB:
            cap = halved
    bt = 1
    for d in range(1, cap + 1):
        if batch % d == 0:
            bt = d
    return bt


def _choose_channel_tile(channels, per_channel_bytes, budget_bytes):
    """Largest multiple-of-8 divisor of `channels` whose (Ct, HW) block fits."""
    cap = max(1, budget_bytes // max(per_channel_bytes, 1))
    best = None
    for d in range(8, channels + 1, 8):
        if channels % d == 0 and d <= cap:
            best = d
    if best is None:
        # TODO(synk): degenerate channel counts (< 8 or not a multiple of 8)
        # fall back to a whole-C block; fine for real SE blocks.
        best = 8 if channels % 8 == 0 else channels
    return best


# ----------------------------------------------------------------------------
# Wrappers
# ----------------------------------------------------------------------------
def _se_one_pass(x, w1, b1, w2, b2, block_budget, vmem_ceiling, per_batch_bytes):
    B, C, HW = x.shape
    S = w1.shape[0]
    b1_row = b1.reshape(1, S).astype(jnp.float32)
    b2_row = b2.reshape(1, C).astype(jnp.float32)

    Bt = _choose_batch_tile(B, per_batch_bytes, block_budget)
    block_bytes = Bt * per_batch_bytes
    w_bytes = (_padded_2d_bytes((S, C), w1.dtype.itemsize)
               + _padded_2d_bytes((1, S), 4)
               + _padded_2d_bytes((C, S), w2.dtype.itemsize)
               + _padded_2d_bytes((1, C), 4))
    # in + out double-buffered (~4x block) + weight buffers + Mosaic scratch
    # headroom; always >= 32 MiB so v5e's 16 MiB default scoped limit never
    # bites, and capped below the generation's physical VMEM.
    vmem_limit = int(max(32 * _MiB,
                         min(vmem_ceiling, 4 * block_bytes + 2 * w_bytes + 4 * _MiB)))

    # TODO(synk): for B == 1 (single-step grid) add an intra-step HW-chunk
    # pipeline (pltpu.emit_pipeline) so DMA-in / compute / DMA-out overlap.
    return pl.pallas_call(
        _se_kernel,
        out_shape=jax.ShapeDtypeStruct((B, C, HW), x.dtype),
        grid_spec=pltpu.PrefetchScalarGridSpec(
            num_scalar_prefetch=0,
            grid=(B // Bt,),
            in_specs=[
                pl.BlockSpec((Bt, C, HW), lambda i: (i, 0, 0)),
                pl.BlockSpec((S, C), lambda i: (0, 0)),   # fc1 weight (native layout)
                pl.BlockSpec((1, S), lambda i: (0, 0)),   # fc1 bias (row)
                pl.BlockSpec((C, S), lambda i: (0, 0)),   # fc2 weight (native layout)
                pl.BlockSpec((1, C), lambda i: (0, 0)),   # fc2 bias (row)
            ],
            out_specs=pl.BlockSpec((Bt, C, HW), lambda i: (i, 0, 0)),
        ),
        compiler_params=pltpu.CompilerParams(
            dimension_semantics=("parallel",),
            vmem_limit_bytes=vmem_limit),
    )(x, w1, b1_row, w2, b2_row)


def _se_two_pass(x, w1, b1, w2, b2, block_budget, vmem_ceiling, hw_pad):
    """C-tiled fallback when one padded batch element exceeds the block budget.
    Pass 1 pools per channel, tiny excitation runs on the (B, C) pooled vector,
    pass 2 applies the scale.  HBM traffic ~1.5x (x read twice)."""
    B, C, HW = x.shape
    itemsize = x.dtype.itemsize
    per_channel_bytes = hw_pad * itemsize
    Ct = _choose_channel_tile(C, per_channel_bytes, block_budget)
    n_ct = pl.cdiv(C, Ct)
    block_bytes = _pad_up(Ct, _sublane_mult(itemsize)) * per_channel_bytes
    vmem_limit = int(max(32 * _MiB,
                         min(vmem_ceiling, 4 * block_bytes + 4 * _MiB)))
    cparams = pltpu.CompilerParams(
        dimension_semantics=("parallel", "parallel"),
        vmem_limit_bytes=vmem_limit)

    pooled = pl.pallas_call(
        _se_pool_kernel,
        out_shape=jax.ShapeDtypeStruct((B, C, 1), jnp.float32),
        grid_spec=pltpu.PrefetchScalarGridSpec(
            num_scalar_prefetch=0,
            grid=(B, n_ct),
            in_specs=[pl.BlockSpec((1, Ct, HW), lambda b, c: (b, c, 0))],
            out_specs=pl.BlockSpec((1, Ct, 1), lambda b, c: (b, c, 0)),
        ),
        compiler_params=cparams,
    )(x)

    # Tiny (B, C) excitation: negligible next to the two HBM passes over x,
    # so plain XLA is fine here.
    p = pooled[:, :, 0]
    h = jnp.maximum(p @ w1.astype(jnp.float32).T + b1.astype(jnp.float32), 0.0)
    s = jax.nn.sigmoid(h @ w2.astype(jnp.float32).T + b2.astype(jnp.float32))
    s3 = s[:, :, None].astype(jnp.float32)               # (B, C, 1)

    return pl.pallas_call(
        _se_scale_kernel,
        out_shape=jax.ShapeDtypeStruct((B, C, HW), x.dtype),
        grid_spec=pltpu.PrefetchScalarGridSpec(
            num_scalar_prefetch=0,
            grid=(B, n_ct),
            in_specs=[pl.BlockSpec((1, Ct, HW), lambda b, c: (b, c, 0)),
                      pl.BlockSpec((1, Ct, 1), lambda b, c: (b, c, 0))],
            out_specs=pl.BlockSpec((1, Ct, HW), lambda b, c: (b, c, 0)),
        ),
        compiler_params=cparams,
    )(x, s3)


def squeeze_excitation(x_nchw, w1, b1, w2, b2, *, force_two_pass=False):
    """SE forward. x_nchw: (B, C, H, W); w1: (S, C); b1: (S,); w2: (C, S); b2: (C,)."""
    B, C, H, W = x_nchw.shape
    HW = H * W
    x = x_nchw.reshape(B, C, HW)          # free reshape (merges minor dims)

    itemsize = x.dtype.itemsize
    hw_pad = _pad_up(HW, 128)             # lane padding
    c_pad = _pad_up(C, _sublane_mult(itemsize))
    per_batch_bytes = c_pad * hw_pad * itemsize   # padded VMEM footprint / batch

    vmem_cap = _vmem_capacity_bytes()
    if vmem_cap >= 100 * _MiB:            # v5e / v6e: 128 MiB physical VMEM
        block_budget = 20 * _MiB
        vmem_ceiling = 100 * _MiB
    else:                                 # v7x: 64 MiB per TC -> keep headroom
        block_budget = 8 * _MiB
        vmem_ceiling = 52 * _MiB

    # TODO(synk): when HW is not a multiple of 128 (e.g. 49/196/784) stores are
    # masked and DMAs row-fragmented; a lane-dense (B, C*HW) relayout variant
    # would recover the remaining HBM-roofline gap for those shapes.
    if force_two_pass or per_batch_bytes > block_budget:
        out = _se_two_pass(x, w1, b1, w2, b2, block_budget, vmem_ceiling, hw_pad)
    else:
        out = _se_one_pass(x, w1, b1, w2, b2, block_budget, vmem_ceiling,
                           per_batch_bytes)
    return out.reshape(B, C, H, W)


# ----------------------------------------------------------------------------
# Reference & test
# ----------------------------------------------------------------------------
def _reference(x, w1, b1, w2, b2):
    pooled = jnp.mean(x, axis=(2, 3))                     # (B, C)
    h = jnp.maximum(pooled @ w1.T + b1, 0.0)              # (B, S)
    s = jax.nn.sigmoid(h @ w2.T + b2)                     # (B, C)
    return x * s[:, :, None, None]


if __name__ == "__main__":
    B, C, H, W = 2, 4, 16, 16
    S = 2  # squeeze channels

    key = jax.random.PRNGKey(0)
    kx, k1, k2, k3, k4 = jax.random.split(key, 5)

    x = jax.random.normal(kx, (B, C, H, W), dtype=jnp.float32)
    # "Conv2d 1x1" params: weight (out, in), bias (out,)
    w1 = jax.random.normal(k1, (S, C), dtype=jnp.float32) * 0.2
    b1 = jax.random.normal(k2, (S,), dtype=jnp.float32) * 0.1
    w2 = jax.random.normal(k3, (C, S), dtype=jnp.float32) * 0.2
    b2 = jax.random.normal(k4, (C,), dtype=jnp.float32) * 0.1

    ref = _reference(x, w1, b1, w2, b2)

    out = jax.block_until_ready(squeeze_excitation(x, w1, b1, w2, b2))
    assert jnp.allclose(out, ref, atol=1e-5, rtol=1e-5), "one-pass mismatch vs reference"

    # Also exercise the C-tiled two-pass fallback path (used for shapes that
    # cannot fit a whole batch element in VMEM, e.g. on v7x).
    out2 = jax.block_until_ready(
        squeeze_excitation(x, w1, b1, w2, b2, force_two_pass=True))
    assert jnp.allclose(out2, ref, atol=1e-5, rtol=1e-5), "two-pass mismatch vs reference"

    print("KERNEL_OK")
</pallas_src>

<mosaic_0001>
module attributes {stable_mosaic.version = 11 : i64} {
  func.func @_se_kernel(%arg0: i32, %arg1: memref<2x4x256xf32, #tpu.memory_space<vmem>>, %arg2: memref<2x4xf32, #tpu.memory_space<vmem>>, %arg3: memref<1x2xf32, #tpu.memory_space<vmem>>, %arg4: memref<4x2xf32, #tpu.memory_space<vmem>>, %arg5: memref<1x4xf32, #tpu.memory_space<vmem>>, %arg6: memref<2x4x256xf32, #tpu.memory_space<vmem>>) attributes {dimension_semantics = [#tpu.dimension_semantics<parallel>], iteration_bounds = array<i64: 1>, scalar_prefetch = 0 : i64, scratch_operands = 0 : i64, tpu.core_type = #tpu.core_type<tc>, window_params = [{transform_indices = @transform_0, window_bounds = array<i64: 2, 4, 256>}, {pipeline_mode = #tpu.pipeline_mode<synchronous>, transform_indices = @transform_1, window_bounds = array<i64: 2, 4>}, {pipeline_mode = #tpu.pipeline_mode<synchronous>, transform_indices = @transform_2, window_bounds = array<i64: 1, 2>}, {pipeline_mode = #tpu.pipeline_mode<synchronous>, transform_indices = @transform_3, window_bounds = array<i64: 4, 2>}, {pipeline_mode = #tpu.pipeline_mode<synchronous>, transform_indices = @transform_4, window_bounds = array<i64: 1, 4>}, {transform_indices = @transform_5, window_bounds = array<i64: 2, 4, 256>}]} {
    %c0 = arith.constant 0 : index
    %c0_0 = arith.constant 0 : index
    %c0_1 = arith.constant 0 : index
    %0 = vector.load %arg1[%c0, %c0_0, %c0_1] : memref<2x4x256xf32, #tpu.memory_space<vmem>>, vector<2x4x256xf32>
    %cst = arith.constant dense<0.000000e+00> : vector<2x4xf32>
    %1 = vector.multi_reduction <add>, %0, %cst [2] : vector<2x4x256xf32> to vector<2x4xf32>
    %cst_2 = arith.constant 3.906250e-03 : f32
    %2 = vector.broadcast %cst_2 : f32 to vector<2x4xf32>
    %3 = arith.mulf %1, %2 : vector<2x4xf32>
    %c0_3 = arith.constant 0 : index
    %c0_4 = arith.constant 0 : index
    %4 = vector.load %arg2[%c0_3, %c0_4] : memref<2x4xf32, #tpu.memory_space<vmem>>, vector<2x4xf32>
    %cst_5 = arith.constant dense<0.000000e+00> : vector<2x2xf32>
    %5 = tpu.matmul %3, %4, %cst_5 {dimension_numbers = #tpu.dot_dimension_numbers<[1], [1], [0], [0], [0, 0, 1, 0], [], []>} : vector<2x4xf32>, vector<2x4xf32>, vector<2x2xf32> -> vector<2x2xf32>
    %c0_6 = arith.constant 0 : index
    %c0_7 = arith.constant 0 : index
    %6 = vector.load %arg3[%c0_6, %c0_7] : memref<1x2xf32, #tpu.memory_space<vmem>>, vector<1x2xf32>
    %7 = vector.broadcast %6 : vector<1x2xf32> to vector<2x2xf32>
    %8 = arith.addf %5, %7 : vector<2x2xf32>
    %cst_8 = arith.constant 0.000000e+00 : f32
    %9 = vector.broadcast %cst_8 : f32 to vector<2x2xf32>
    %10 = arith.maximumf %8, %9 : vector<2x2xf32>
    %c0_9 = arith.constant 0 : index
    %c0_10 = arith.constant 0 : index
    %11 = vector.load %arg4[%c0_9, %c0_10] : memref<4x2xf32, #tpu.memory_space<vmem>>, vector<4x2xf32>
    %cst_11 = arith.constant dense<0.000000e+00> : vector<2x4xf32>
    %12 = tpu.matmul %10, %11, %cst_11 {dimension_numbers = #tpu.dot_dimension_numbers<[1], [1], [0], [0], [0, 0, 1, 0], [], []>} : vector<2x2xf32>, vector<4x2xf32>, vector<2x4xf32> -> vector<2x4xf32>
    %c0_12 = arith.constant 0 : index
    %c0_13 = arith.constant 0 : index
    %13 = vector.load %arg5[%c0_12, %c0_13] : memref<1x4xf32, #tpu.memory_space<vmem>>, vector<1x4xf32>
    %14 = vector.broadcast %13 : vector<1x4xf32> to vector<2x4xf32>
    %15 = arith.addf %12, %14 : vector<2x4xf32>
    %16 = arith.negf %15 : vector<2x4xf32>
    %17 = math.exp %16 : vector<2x4xf32>
    %cst_14 = arith.constant 1.000000e+00 : f32
    %18 = vector.broadcast %cst_14 : f32 to vector<2x4xf32>
    %19 = arith.addf %18, %17 : vector<2x4xf32>
    %20 = arith.divf %18, %19 : vector<2x4xf32>
    %c0_15 = arith.constant 0 : index
    %c0_16 = arith.constant 0 : index
    %c0_17 = arith.constant 0 : index
    %21 = vector.load %arg1[%c0_15, %c0_16, %c0_17] : memref<2x4x256xf32, #tpu.memory_space<vmem>>, vector<2x4x256xf32>
    %22 = vector.shape_cast %20 : vector<2x4xf32> to vector<2x4x1xf32>
    %23 = vector.broadcast %22 : vector<2x4x1xf32> to vector<2x4x256xf32>
    %24 = arith.mulf %21, %23 : vector<2x4x256xf32>
    %c0_18 = arith.constant 0 : index
    %c0_19 = arith.constant 0 : index
    %c0_20 = arith.constant 0 : index
    %25 = vector.load %arg6[%c0_18, %c0_19, %c0_20] : memref<2x4x256xf32, #tpu.memory_space<vmem>>, vector<2x4x256xf32>
    tpu.vector_store %arg6[%c0_18, %c0_19, %c0_20], %24 {strides = array<i32>} : memref<2x4x256xf32, #tpu.memory_space<vmem>>, vector<2x4x256xf32>,
    return
  }
  func.func @transform_0(%arg0: i32) -> (i32, i32, i32) {
    %c0_i32 = arith.constant 0 : i32
    %c0_i32_0 = arith.constant 0 : i32
    %c0_i32_1 = arith.constant 0 : i32
    return %arg0, %c0_i32, %c0_i32_0 : i32, i32, i32
  }
  func.func @transform_1(%arg0: i32) -> (i32, i32) {
    %c0_i32 = arith.constant 0 : i32
    %c0_i32_0 = arith.constant 0 : i32
    %c0_i32_1 = arith.constant 0 : i32
    return %c0_i32, %c0_i32_0 : i32, i32
  }
  func.func @transform_2(%arg0: i32) -> (i32, i32) {
    %c0_i32 = arith.constant 0 : i32
    %c0_i32_0 = arith.constant 0 : i32
    %c0_i32_1 = arith.constant 0 : i32
    return %c0_i32, %c0_i32_0 : i32, i32
  }
  func.func @transform_3(%arg0: i32) -> (i32, i32) {
    %c0_i32 = arith.constant 0 : i32
    %c0_i32_0 = arith.constant 0 : i32
    %c0_i32_1 = arith.constant 0 : i32
    return %c0_i32, %c0_i32_0 : i32, i32
  }
  func.func @transform_4(%arg0: i32) -> (i32, i32) {
    %c0_i32 = arith.constant 0 : i32
    %c0_i32_0 = arith.constant 0 : i32
    %c0_i32_1 = arith.constant 0 : i32
    return %c0_i32, %c0_i32_0 : i32, i32
  }
  func.func @transform_5(%arg0: i32) -> (i32, i32, i32) {
    %c0_i32 = arith.constant 0 : i32
    %c0_i32_0 = arith.constant 0 : i32
    %c0_i32_1 = arith.constant 0 : i32
    return %arg0, %c0_i32, %c0_i32_0 : i32, i32, i32
  }
}

</mosaic_0001>

<bundles_post_ra>
// kernel: tpu_custom_call.1
= control target key start
LH: loop header
LB: loop body
LE: loop exit
PB: predicated region body
PF: predicated region fallthrough
CT: control target
= control target key end

     0   :  { %10 = vsyncpa [#allocation3], 0  ;;  %s474_s0 = inlined_call_operand.hbm [shape: f32[2,4,256], index: 0, kind: input, shape index: {}]   ;;  %s475_s1 = inlined_call_operand.vmem [shape: f32[2,4], index: 1, kind: input, shape index: {}]   ;;  %s476_s2 = inlined_call_operand.vmem [shape: f32[1,2], index: 2, kind: input, shape index: {}]   ;;  %s477_s3 = inlined_call_operand.vmem [shape: f32[4,2], index: 3, kind: input, shape index: {}]   ;;  %s478_s4 = inlined_call_operand.vmem [shape: f32[1,4], index: 4, kind: input, shape index: {}]   ;;  %s479_s5 = inlined_call_operand.hbm [shape: f32[2,4,256], index: 5, kind: output, shape index: {}]  }
   0x1   :  { %11 = vsyncpa [#allocation4], 0  ;;  %s381_s18 = smov [#allocation2]   ;;  %s333_s22 = scalar_lea.hbm %s474_s0, 256 }
   0x2   :  { %s17_s19 = sshll.u32 %s381_s18, 4  ;;  %p334_p0 = scmp.ne.s32.totalorder %s474_s0, %s333_s22  ;;  %s18_s19 = int_to_ptr.vmem [resolvable:$true] %s17_s19 }
   0x3   :  { %p337_p1 = scmp.lt.u32.totalorder %s333_s22, %s474_s0 }
   0x5   :  { %p339_p2 = pnand %p337_p1, %p334_p0 }
   0x7   :  { %342 = shalt.err (!%p339_p2)
}
   0x8   :  { %s343_s27 = scalar_lea.vmem %s18_s19, 256  ;;  %p348_p4 = scmp.lt.s32.totalorder %s18_s19, %s18_s19 }
   0x9   :  { %p344_p3 = scmp.ne.s32.totalorder %s18_s19, %s343_s27  ;;  %p349_p5 = scmp.lt.s32.totalorder %s343_s27, %s343_s27 }
   0xb   :  { %p350_p6 = por %p349_p5, %p348_p4 }
   0xd   :  { %p351_p7 = pnand %p350_p6, %p344_p3 }
   0xf   :  { %354 = shalt.err (!%p351_p7)
}
  0x10   :  { %s382_s28 = smov 128   ;;  %s383_s29 = smov 8  }
  0x11   :  { %23 = dma.hbm_to_vmem [thread:$0]  %s474_s0, 256, %s18_s19, [#allocation3], %s382_s28, %s382_s28, %s383_s29  }
  0x12   :  { %377 = dma.done.wait [#allocation3], 256  }
  0x13   :  { %378 = vsyncadd [#allocation3], 4294967040  ;;  %vm43_vm0 = vcmask 1043456   ;;  %v433_v0 = vld [vmem:[#allocation2] sm:$0xff]  ;;  %v435_v1 = vld [vmem:[#allocation2 + $0x8] sm:$0xff]  ;;  %v384_v10 = vmov 0.0   ;;  %v66_v12 = vlaneseq }
  0x14   :  { %v39_v2 = vcombine.high %v433_v0, %v433_v0  ;;  %v44_v3 = vsel %vm43_vm0, %v433_v0, 0.0  ;;  %v40_v4 = vcombine.high %v435_v1, %v435_v1  ;;  %v49_v6 = vsel %vm43_vm0, %v435_v1, 0.0  ;;  %310 = vmatprep.subr.mxu0 %v384_v10  ;;  %v56_v11 = vld [vmem:[%s475_s1] sm:$0x3]  ;;  %315 = vmatprep.subr.mxu1 %v384_v10 }
  0x15   :  { %vm78_vm1 = vcmask 31744   ;;  %vm385_vm2 = vmmov 0   ;;  %v67_v13 = vand.u32 127, %v66_v12  ;;  %v69_v14 = vshrl.u32 %v66_v12, 7  ;;  %v155_v23 = vld [vmem:[%s477_s3] sm:$0xf] }
  0x16   :  { %v45_v5 = vsel %vm43_vm0, %v39_v2, 0.0  ;;  %v50_v7 = vsel %vm43_vm0, %v40_v4, 0.0  ;;  %311 = vmatpush3.xpose.msk.msra.mxu0 %vm78_vm1, %v56_v11  ;;  %312 = vmatprep.mubr.msk.f32.mxu0 %vm385_vm2, %v384_v10  ;;  %vm76_vm3 = vcmask 1041409   ;;  %vm163_vm4 = vcmask 15360   ;;  %v299_v24 = vld [vmem:[%s476_s2] ss:$0 sm:$0xff] }
  0x17   :  { %v46_v8 = vadd.f32 %v45_v5, %v44_v3  ;;  %v51_v9 = vadd.f32 %v50_v7, %v49_v6  ;;  %317 = vmatprep.mubr.msk.f32.mxu1 %vm385_vm2, %v384_v10  ;;  %v70_v16 = vsub.s32 %v67_v13, %v69_v14  ;;  %316 = vmatpush3.xpose.msk.msra.mxu1 %vm163_vm4, %v155_v23  ;;  %v302_v29 = vld [vmem:[%s478_s4] ss:$0 sm:$0xff]  ;;  %v248_v36 = vsub.s32 0, %v69_v14  ;;  %s387_s2 = smov [#allocation5]  }
  0x18   :  { %v255_v39 = vsub.s32 1, %v69_v14  ;;  %v386_v41 = vmov 839922192   ;;  %s287_s3 = sshll.u32 %s387_s2, 4  ;;  %s288_s3 = int_to_ptr.vmem [resolvable:$true] %s287_s3 }
  0x19   :  { %47 = vadd.xlane.f32.xlu0 %v46_v8  ;;  %v263_v42 = vunpack.c.l.s4 %v386_v41  ;;  %s355_s4 = scalar_lea.vmem %s288_s3, 256  ;;  %p360_p9 = scmp.lt.s32.totalorder %s288_s3, %s288_s3 }
  0x1a   :  { %p356_p8 = scmp.ne.s32.totalorder %s288_s3, %s355_s4  ;;  %p361_p10 = scmp.lt.s32.totalorder %s355_s4, %s355_s4 }
  0x1b   :  { %v264_v43 = vunpack.c.0.s8 %v263_v42 }
  0x1c   :  { %p362_p11 = por %p361_p10, %p360_p9 }
  0x1d   :  { %52 = vadd.xlane.f32.xlu0 %v51_v9  ;;  %v267_v44 = vsub.s32 %v264_v43, %v69_v14 }
  0x1e   :  { %p363_p12 = pnand %p362_p11, %p356_p8 }
  0xa6   :  { %v48_v15 = vpop.xlane.xlu0 %47 }
  0xa7   :  { %v54_v17 = vmul.f32 0.00390625, %v48_v15 }
  0xa9   :  { %v71_v20 = vrot.slane %v54_v17, %v70_v16 }
  0xaa   :  { %v53_v18 = vpop.xlane.xlu0 %52 }
  0xab   :  { %v55_v19 = vmul.f32 0.00390625, %v53_v18 }
  0xad   :  { %v75_v21 = vrot.slane %v55_v19, %v70_v16 }
  0xaf   :  { %v77_v22 = vsel %vm76_vm3, %v75_v21, %v71_v20 }
  0xb0   :  { %313 = vmatmul.mubr.msk.f32.vlgmr.msra.gmra.mrb[0].mxu0 %vm78_vm1, %v77_v22 }
 0x183   :  { %v150_v25 = vpop.f32.mrb[0].mxu0 }
 0x184   :  { %v151_v26 = vadd.f32 %v299_v24, %v150_v25  ;;  %v314_v27 = vpop.f32.mrb[1].mxu0 }
 0x186   :  { %v154_v28 = vmax.f32 %v151_v26, 0.0 }
 0x188   :  { %318 = vmatmul.mubr.msk.f32.vlgmr.msra.gmra.mrb[0].mxu1 %vm163_vm4, %v154_v28 }
 0x25b   :  { %v236_v30 = vpop.f32.mrb[0].mxu1 }
 0x25c   :  { %v237_v31 = vadd.f32 %v302_v29, %v236_v30  ;;  %v319_v32 = vpop.f32.mrb[1].mxu1 }
 0x25e   :  { %v305_v33 = vmul.f32 -1.442695, %v237_v31 }
 0x260   :  { %329 = vpow2.f32 %v305_v33 }
 0x26a   :  { %v330_v34 = vpop.eup %329 }
 0x26b   :  { %v243_v35 = vadd.f32 1.0, %v330_v34 }
 0x26d   :  { %331 = vrcp.f32 %v243_v35 }
 0x277   :  { %v332_v37 = vpop.eup %331 }
 0x278   :  { %v249_v38 = vrot.slane %v332_v37, %v248_v36  ;;  %v256_v40 = vrot.slane %v332_v37, %v255_v39 }
 0x27a   :  { %251 = vbcast.lane.b32.xlu1 %v249_v38, 256 }
 0x27e   :  { %258 = vbcast.lane.b32.xlu1 %v256_v40, 256 }
 0x2ec   :  { %v252_v45 = vpop.permute.xlu1 %251 }
 0x2ed   :  { %v268_v46 = vrot.slane %v252_v45, %v267_v44 }
 0x2ef   :  { %v278_v47 = vmul.f32 %v268_v46, %v433_v0 }
 0x2f0   :  { %v259_v48 = vpop.permute.xlu1 %258 }
 0x2f1   :  { %280 = vst [vmem:[#allocation5] sm:$0xff] %v278_v47  ;;  %v275_v49 = vrot.slane %v259_v48, %v267_v44 }
 0x2f3   :  { %v279_v50 = vmul.f32 %v275_v49, %v435_v1 }
 0x2f5   :  { %281 = vst [vmem:[#allocation5 + $0x8] sm:$0xff] %v279_v50 }
 0x2f6   :  { %366 = shalt.err (!%p363_p12)
}
 0x2f7   :  { %s367_s15 = scalar_lea.hbm %s479_s5, 256 }
 0x2f8   :  { %p368_p13 = scmp.ne.s32.totalorder %s479_s5, %s367_s15  ;;  %p371_p0 = scmp.lt.u32.totalorder %s367_s15, %s479_s5 }
 0x2fa   :  { %p373_p1 = pnand %p371_p0, %p368_p13 }
 0x2fc   :  { %376 = shalt.err (!%p373_p1)
}
 0x2fd   :  { %293 = dma.vmem_to_hbm [thread:$0]  %s288_s3, 256, %s479_s5, [#allocation4], %s382_s28, %s382_s28, %s383_s29  }
 0x2fe   :  { %379 = dma.done.wait [#allocation4], 256  }
 0x2ff   :  { %380 = vsyncadd [#allocation4], 4294967040 }
 0x300   :  { %297 = vsyncpa [#allocation3], 1 }
 0x301   :  { %298 = vsyncpa [#allocation4], 1 }

</bundles_post_ra>
